<compile_context>
chip_gen: v6e
topology: v6e:2x2x1
jax: 0.10.0
libtpu: 0.0.40
codegen_flags: <defaults>
</compile_context>

<pallas_src>
import jax
import jax.numpy as jnp
from jax import lax
from jax.experimental import pallas as pl
from jax.experimental.pallas import tpu as pltpu

EPS = 1e-5          # BatchNorm2d default eps
NEG_SLOPE = 0.01    # nn.LeakyReLU() default negative_slope


def _conv_stats_kernel(w_ref, p_ref, y_ref, sum_ref, ssq_ref):
    """Pass 1: conv tile (MXU bf16 in / f32 acc), bf16 store, per-tile channel stats.

    w_ref:   (Cout, K)     bf16  (same block every step)
    p_ref:   (K, TM)       bf16  (M tile on lanes)
    y_ref:   (Cout, TM)    bf16  raw conv tile (lane-dense store; halves the HBM write)
    sum_ref: (1, Cout, 1)  f32   per-tile partial sum   (independent block per step)
    ssq_ref: (1, Cout, 1)  f32   per-tile partial sumsq (independent block per step)
    """
    y = jnp.dot(w_ref[...], p_ref[...], preferred_element_type=jnp.float32)
    y_ref[...] = y.astype(y_ref.dtype)
    # Stats from the f32 accumulation (before the bf16 cast); last-axis reduce is cheap.
    sum_ref[...] = jnp.sum(y, axis=-1, keepdims=True).reshape(sum_ref.shape)
    ssq_ref[...] = jnp.sum(y * y, axis=-1, keepdims=True).reshape(ssq_ref.shape)


def _bn_act_kernel(y_ref, scale_ref, shift_ref, o_ref):
    """Pass 2: precomputed per-channel scale/shift + LeakyReLU, all f32 on the VPU."""
    z = y_ref[...].astype(jnp.float32) * scale_ref[...] + shift_ref[...]
    o_ref[...] = jnp.where(z >= 0, z, NEG_SLOPE * z)


def _im2col_t_nchw(x, kh, kw, stride, pad):
    """x: (N, C, H, W) -> patches^T (C*kh*kw, N*Ho*Wo), dtype preserved.

    K-order = (c, i*kw + j) to match weight.reshape(Cout, -1); M-order = (n, ho, wo).
    """
    n, c, h, w = x.shape
    xp = jnp.pad(x, ((0, 0), (0, 0), (pad, pad), (pad, pad)))
    ho = (h + 2 * pad - kh) // stride + 1
    wo = (w + 2 * pad - kw) // stride + 1
    cols = []
    for i in range(kh):
        for j in range(kw):
            cols.append(xp[:, :, i:i + ho * stride:stride, j:j + wo * stride:stride])
    p = jnp.stack(cols, axis=0)               # (kh*kw, N, C, Ho, Wo)
    p = jnp.transpose(p, (2, 0, 1, 3, 4))     # (C, kh*kw, N, Ho, Wo)
    return p.reshape(c * kh * kw, n * ho * wo), ho, wo


def _vmem_limit_bytes():
    """Generation-aware scoped-VMEM limit (v7x: 64 MiB physical; v5e/v6e: 128 MiB)."""
    cap = 64 << 20
    try:
        info = pltpu.get_tpu_info()
        cap = int(getattr(info, "vmem_capacity_bytes", cap) or cap)
    except Exception:
        pass
    return int(min(max(cap - (16 << 20), 32 << 20), 100 << 20))


def _round_up(v, q):
    return -(-v // q) * q


def conv_bn_leakyrelu(x_nchw, weight, bias, gamma, beta, *, stride=1, padding=1):
    """x_nchw: (N, Cin, H, W); weight: (Cout, Cin, kh, kw); returns (N, Cout, Ho, Wo) f32."""
    del bias  # training-mode BN subtracts the batch mean -> per-channel constants cancel
    n, cin, h, w = x_nchw.shape
    cout, _, kh, kw = weight.shape

    # im2col directly in bf16 (no f32 (K, M) materialization + extra astype pass).
    pt, ho, wo = _im2col_t_nchw(x_nchw.astype(jnp.bfloat16), kh, kw, stride, padding)
    k, m = pt.shape                           # K = Cin*kh*kw, M = N*Ho*Wo

    vmem_limit = _vmem_limit_bytes()
    budget = vmem_limit - (8 << 20)           # headroom for compiler scratch / partials

    # Pass-1 tile: largest 128-multiple whose double-buffered working set fits the budget.
    #   2x-buffered bf16 patches (k*tm*2B) + 2x-buffered bf16 y (cout*tm*2B) + bf16 weights.
    bytes_per_lane = 2 * (k * 2 + cout * 2)
    tm1 = max(budget - cout * k * 2, 0) // max(bytes_per_lane, 1)
    tm1 = max(128, min(2048, (tm1 // 128) * 128))
    tm1 = min(tm1, _round_up(m, 128))
    n1 = -(-m // tm1)

    # Pass-2 tile: group several pass-1 tiles (elementwise pass, no K dim -> cheap blocks).
    group = max(1, min(n1, 8192 // tm1))
    tm2_cap = max(budget // (12 * max(cout, 1)), tm1)   # 2x-buffered bf16 in + f32 out
    group = max(1, min(group, tm2_cap // tm1))
    n1 = -(-n1 // group) * group              # pad tile count so pass-2 blocks divide evenly
    m_pad = n1 * tm1
    tm2 = group * tm1
    n2 = n1 // group

    if m_pad != m:
        pt = jnp.pad(pt, ((0, 0), (0, m_pad - m)))   # zero cols -> zero conv output / stats

    w_bf16 = weight.reshape(cout, cin * kh * kw).astype(jnp.bfloat16)   # (Cout, K)

    # Pass 1: conv matmul per M tile + per-tile partial channel stats.
    # Fully parallel grid (no resident accumulator) -> shards across both TCs on v7x.
    y, psum, pssq = pl.pallas_call(
        _conv_stats_kernel,
        out_shape=(jax.ShapeDtypeStruct((cout, m_pad), jnp.bfloat16),
                   jax.ShapeDtypeStruct((n1, cout, 1), jnp.float32),
                   jax.ShapeDtypeStruct((n1, cout, 1), jnp.float32)),
        grid=(n1,),
        in_specs=[
            pl.BlockSpec((cout, k), lambda i: (0, 0)),
            pl.BlockSpec((k, tm1), lambda i: (0, i)),
        ],
        out_specs=(
            pl.BlockSpec((cout, tm1), lambda i: (0, i)),
            pl.BlockSpec((1, cout, 1), lambda i: (i, 0, 0)),
            pl.BlockSpec((1, cout, 1), lambda i: (i, 0, 0)),
        ),
        compiler_params=pltpu.CompilerParams(
            dimension_semantics=("parallel",),
            vmem_limit_bytes=vmem_limit),
    )(w_bf16, pt)

    # Fold BN into one scale/shift per channel (tiny JAX op on the per-tile partials).
    # NOTE: var = E[x^2] - E[x]^2 in f32; partials give a shallow tree combine.
    csum = jnp.sum(psum, axis=0)                                  # (Cout, 1)
    cssq = jnp.sum(pssq, axis=0)                                  # (Cout, 1)
    mean = csum / float(m)
    var = jnp.maximum(cssq / float(m) - mean * mean, 0.0)         # biased var, clamped
    scale = gamma.reshape(cout, 1).astype(jnp.float32) * lax.rsqrt(var + EPS)
    shift = beta.reshape(cout, 1).astype(jnp.float32) - mean * scale

    # Pass 2: fused per-channel scale/shift + LeakyReLU, large lane blocks, fully parallel.
    out = pl.pallas_call(
        _bn_act_kernel,
        out_shape=jax.ShapeDtypeStruct((cout, m_pad), jnp.float32),
        grid=(n2,),
        in_specs=[
            pl.BlockSpec((cout, tm2), lambda i: (0, i)),
            pl.BlockSpec((cout, 1), lambda i: (0, 0)),
            pl.BlockSpec((cout, 1), lambda i: (0, 0)),
        ],
        out_specs=pl.BlockSpec((cout, tm2), lambda i: (0, i)),
        compiler_params=pltpu.CompilerParams(
            dimension_semantics=("parallel",),
            vmem_limit_bytes=vmem_limit),
    )(y, scale, shift)

    out = out[:, :m].reshape(cout, n, ho, wo)          # drop M padding
    return jnp.transpose(out, (1, 0, 2, 3))            # -> NCHW


def _reference(x, weight, bias, gamma, beta, stride, padding):
    """Pure-JAX f32 reference of Conv2d -> training-mode BN -> LeakyReLU."""
    n, cin, h, w = x.shape
    cout = weight.shape[0]
    kh, kw = weight.shape[2], weight.shape[3]
    pt, ho, wo = _im2col_t_nchw(x, kh, kw, stride, padding)
    y = weight.reshape(cout, -1) @ pt + bias[:, None]          # bias cancels below
    mean = y.mean(axis=1, keepdims=True)
    var = ((y - mean) ** 2).mean(axis=1, keepdims=True)
    z = (y - mean) * lax.rsqrt(var + EPS) * gamma[:, None] + beta[:, None]
    z = jnp.where(z >= 0, z, NEG_SLOPE * z)
    return jnp.transpose(z.reshape(cout, n, ho, wo), (1, 0, 2, 3))


if __name__ == "__main__":
    # ConvBN(4, 8, 3, 1, 1): Conv2d(in=4, out=8, k=3, stride=1, pad=1) + BN(8) + LeakyReLU
    N, CIN, H, W = 2, 4, 16, 16
    COUT, KH, KW = 8, 3, 3

    key = jax.random.PRNGKey(0)
    kx, kw_, kb = jax.random.split(key, 3)
    x = jax.random.normal(kx, (N, CIN, H, W), dtype=jnp.float32)
    weight = 0.1 * jax.random.normal(kw_, (COUT, CIN, KH, KW), dtype=jnp.float32)
    bias = 0.1 * jax.random.normal(kb, (COUT,), dtype=jnp.float32)
    gamma = jnp.ones((COUT,), dtype=jnp.float32)   # BatchNorm2d default weight
    beta = jnp.zeros((COUT,), dtype=jnp.float32)   # BatchNorm2d default bias

    y = conv_bn_leakyrelu(x, weight, bias, gamma, beta, stride=1, padding=1)
    y = jax.block_until_ready(y)
    assert y.shape == (N, COUT, H, W)

    # Loose tolerance: bf16 MXU operands + bf16 intermediate (f32 accumulation / stats).
    y_ref = _reference(x, weight, bias, gamma, beta, 1, 1)
    max_err = float(jnp.max(jnp.abs(y - y_ref)))
    assert max_err < 5e-2, f"max abs error too large: {max_err}"

    print("KERNEL_OK")
</pallas_src>

<mosaic_0001>
module attributes {stable_mosaic.version = 11 : i64} {
  func.func @_conv_stats_kernel(%arg0: i32, %arg1: memref<8x36xbf16, #tpu.memory_space<vmem>>, %arg2: memref<36x512xbf16, #tpu.memory_space<vmem>>, %arg3: memref<8x512xbf16, #tpu.memory_space<vmem>>, %arg4: memref<1x8x1xf32, #tpu.memory_space<vmem>>, %arg5: memref<1x8x1xf32, #tpu.memory_space<vmem>>) attributes {dimension_semantics = [#tpu.dimension_semantics<parallel>], iteration_bounds = array<i64: 1>, scalar_prefetch = 0 : i64, scratch_operands = 0 : i64, tpu.core_type = #tpu.core_type<tc>, window_params = [{pipeline_mode = #tpu.pipeline_mode<synchronous>, transform_indices = @transform_0, window_bounds = array<i64: 8, 36>}, {transform_indices = @transform_1, window_bounds = array<i64: 36, 512>}, {transform_indices = @transform_2, window_bounds = array<i64: 8, 512>}, {transform_indices = @transform_3, window_bounds = array<i64: 1, 8, 1>}, {transform_indices = @transform_4, window_bounds = array<i64: 1, 8, 1>}]} {
    %c0 = arith.constant 0 : index
    %c0_0 = arith.constant 0 : index
    %0 = vector.load %arg1[%c0, %c0_0] : memref<8x36xbf16, #tpu.memory_space<vmem>>, vector<8x36xbf16>
    %c0_1 = arith.constant 0 : index
    %c0_2 = arith.constant 0 : index
    %1 = vector.load %arg2[%c0_1, %c0_2] : memref<36x512xbf16, #tpu.memory_space<vmem>>, vector<36x512xbf16>
    %cst = arith.constant dense<0.000000e+00> : vector<8x512xf32>
    %2 = tpu.matmul %0, %1, %cst {dimension_numbers = #tpu.dot_dimension_numbers<[1], [0], [0], [1], [0, 0, 1, 1], [], []>} : vector<8x36xbf16>, vector<36x512xbf16>, vector<8x512xf32> -> vector<8x512xf32>
    %3 = arith.truncf %2 : vector<8x512xf32> to vector<8x512xbf16>
    %c0_3 = arith.constant 0 : index
    %c0_4 = arith.constant 0 : index
    %4 = vector.load %arg3[%c0_3, %c0_4] : memref<8x512xbf16, #tpu.memory_space<vmem>>, vector<8x512xbf16>
    tpu.vector_store %arg3[%c0_3, %c0_4], %3 {strides = array<i32>} : memref<8x512xbf16, #tpu.memory_space<vmem>>, vector<8x512xbf16>,
    %cst_5 = arith.constant dense<0.000000e+00> : vector<8xf32>
    %5 = vector.multi_reduction <add>, %2, %cst_5 [1] : vector<8x512xf32> to vector<8xf32>
    %6 = vector.shape_cast %5 : vector<8xf32> to vector<8x1xf32>
    %7 = vector.shape_cast %6 : vector<8x1xf32> to vector<1x8x1xf32>
    %c0_6 = arith.constant 0 : index
    %c0_7 = arith.constant 0 : index
    %c0_8 = arith.constant 0 : index
    %8 = vector.load %arg4[%c0_6, %c0_7, %c0_8] : memref<1x8x1xf32, #tpu.memory_space<vmem>>, vector<1x8x1xf32>
    tpu.vector_store %arg4[%c0_6, %c0_7, %c0_8], %7 {strides = array<i32>} : memref<1x8x1xf32, #tpu.memory_space<vmem>>, vector<1x8x1xf32>,
    %9 = arith.mulf %2, %2 : vector<8x512xf32>
    %cst_9 = arith.constant dense<0.000000e+00> : vector<8xf32>
    %10 = vector.multi_reduction <add>, %9, %cst_9 [1] : vector<8x512xf32> to vector<8xf32>
    %11 = vector.shape_cast %10 : vector<8xf32> to vector<8x1xf32>
    %12 = vector.shape_cast %11 : vector<8x1xf32> to vector<1x8x1xf32>
    %c0_10 = arith.constant 0 : index
    %c0_11 = arith.constant 0 : index
    %c0_12 = arith.constant 0 : index
    %13 = vector.load %arg5[%c0_10, %c0_11, %c0_12] : memref<1x8x1xf32, #tpu.memory_space<vmem>>, vector<1x8x1xf32>
    tpu.vector_store %arg5[%c0_10, %c0_11, %c0_12], %12 {strides = array<i32>} : memref<1x8x1xf32, #tpu.memory_space<vmem>>, vector<1x8x1xf32>,
    return
  }
  func.func @transform_0(%arg0: i32) -> (i32, i32) {
    %c0_i32 = arith.constant 0 : i32
    %c0_i32_0 = arith.constant 0 : i32
    %c0_i32_1 = arith.constant 0 : i32
    return %c0_i32, %c0_i32_0 : i32, i32
  }
  func.func @transform_1(%arg0: i32) -> (i32, i32) {
    %c0_i32 = arith.constant 0 : i32
    %c0_i32_0 = arith.constant 0 : i32
    return %c0_i32, %arg0 : i32, i32
  }
  func.func @transform_2(%arg0: i32) -> (i32, i32) {
    %c0_i32 = arith.constant 0 : i32
    %c0_i32_0 = arith.constant 0 : i32
    return %c0_i32, %arg0 : i32, i32
  }
  func.func @transform_3(%arg0: i32) -> (i32, i32, i32) {
    %c0_i32 = arith.constant 0 : i32
    %c0_i32_0 = arith.constant 0 : i32
    %c0_i32_1 = arith.constant 0 : i32
    return %arg0, %c0_i32, %c0_i32_0 : i32, i32, i32
  }
  func.func @transform_4(%arg0: i32) -> (i32, i32, i32) {
    %c0_i32 = arith.constant 0 : i32
    %c0_i32_0 = arith.constant 0 : i32
    %c0_i32_1 = arith.constant 0 : i32
    return %arg0, %c0_i32, %c0_i32_0 : i32, i32, i32
  }
}

</mosaic_0001>

<bundles_post_ra>
// kernel: tpu_custom_call.1
= control target key start
LH: loop header
LB: loop body
LE: loop exit
PB: predicated region body
PF: predicated region fallthrough
CT: control target
= control target key end

     0   :  { %10 = vsyncpa [#allocation3], 0  ;;  %s415_s0 = inlined_call_operand.hbm [shape: bf16[8,36], index: 0, kind: input, shape index: {}]   ;;  %s416_s1 = inlined_call_operand.hbm [shape: bf16[36,512], index: 1, kind: input, shape index: {}]   ;;  %s417_s2 = inlined_call_operand.hbm [shape: bf16[8,512], index: 2, kind: output, shape index: {0}]   ;;  %s418_s3 = inlined_call_operand.vmem [shape: f32[1,8,1], index: 3, kind: output, shape index: {1}]   ;;  %s419_s4 = inlined_call_operand.vmem [shape: f32[1,8,1], index: 4, kind: output, shape index: {2}]  }
   0x1   :  { %11 = vsyncpa [#allocation6], 0 }
   0x2   :  { %12 = vsyncpa [#allocation4], 0  ;;  %s369_s15 = smov [#allocation2]   ;;  %s370_s17 = smov [#allocation5]  }
   0x3   :  { %s19_s16 = sshll.u32 %s369_s15, 4  ;;  %s28_s18 = sshll.u32 %s370_s17, 4  ;;  %s20_s16 = int_to_ptr.vmem [resolvable:$true] %s19_s16  ;;  %s29_s18 = int_to_ptr.vmem [resolvable:$true] %s28_s18 }
   0x4   :  { %s311_s19 = scalar_lea.vmem %s20_s16, 64  ;;  %p316_p1 = scmp.lt.s32.totalorder %s20_s16, %s20_s16 }
   0x5   :  { %p312_p0 = scmp.ne.s32.totalorder %s20_s16, %s311_s19  ;;  %p317_p2 = scmp.lt.s32.totalorder %s311_s19, %s311_s19 }
   0x7   :  { %p318_p3 = por %p317_p2, %p316_p1 }
   0x9   :  { %p319_p4 = pnand %p318_p3, %p312_p0 }
   0xb   :  { %322 = shalt.err (!%p319_p4)
}
   0xc   :  { %22 = dma.hbm_to_vmem [thread:$0]  %s415_s0, 64, %s20_s16, [#allocation3]  }
   0xd   :  { %s331_s22 = scalar_lea.vmem %s29_s18, 1280  ;;  %p336_p6 = scmp.lt.s32.totalorder %s29_s18, %s29_s18 }
   0xe   :  { %p332_p5 = scmp.ne.s32.totalorder %s29_s18, %s331_s22  ;;  %p337_p7 = scmp.lt.s32.totalorder %s331_s22, %s331_s22 }
  0x10   :  { %p338_p8 = por %p337_p7, %p336_p6 }
  0x12   :  { %p339_p9 = pnand %p338_p8, %p332_p5 }
  0x14   :  { %342 = shalt.err (!%p339_p9)
}
  0x15   :  { %s371_s23 = smov 256   ;;  %s372_s24 = smov 16  }
  0x16   :  { %34 = dma.hbm_to_vmem [thread:$0]  %s416_s1, 1280, %s29_s18, [#allocation6], %s371_s23, %s371_s23, %s372_s24  }
  0x17   :  { %363 = dma.done.wait [#allocation3], 64  }
  0x18   :  { %364 = vsyncadd [#allocation3], 4294967232 }
  0x19   :  { %365 = dma.done.wait [#allocation6], 1280  }
  0x1a   :  { %366 = vsyncadd [#allocation6], 4294966016  ;;  %v373_v0 = vmov 0   ;;  %v51_v1 = vld [vmem:[#allocation5 + $0x40] sm:$0x33]  ;;  %vm107_vm0 = vcmask 1041408  }
  0x1b   :  { %152 = vmatprep.mubr.bf16.mxu0 %v373_v0  ;;  %193 = vmatprep.mubr.bf16.mxu1 %v373_v0  ;;  %v52_v2 = vld [vmem:[#allocation5 + $0x48] sm:$0x33]  ;;  %v270_v3 = vcombine.high %v51_v1, %v51_v1  ;;  %v269_v5 = vcombine.low %v51_v1, %v51_v1  ;;  %v291_v7 = vld [vmem:[#allocation5 + $0x24] ss:$16 sps:$4 sm:$0xff]   ;;  %v295_v11 = vld [vmem:[#allocation5 + $0x20] ss:$16 sps:$4 sm:$0xff]  }
  0x1c   :  { %v272_v4 = vcombine.high %v52_v2, %v52_v2  ;;  %v271_v6 = vcombine.low %v52_v2, %v52_v2  ;;  %v293_v8 = vld [vmem:[#allocation5 + $0x2c] ss:$16 sps:$4 sm:$0xff]   ;;  %v296_v12 = vld [vmem:[#allocation5 + $0x28] ss:$16 sps:$4 sm:$0xff]   ;;  %v297_v13 = vld [vmem:[#allocation5 + $0x4] ss:$16 sps:$4 sm:$0xff]  }
  0x1d   :  { %273 = vmatprep.subr.msk.bf16.mxu0 %vm107_vm0, %v270_v3  ;;  %v109_v9 = vsel %vm107_vm0, %v269_v5, 0  ;;  %v299_v14 = vld [vmem:[#allocation5 + $0xc] ss:$16 sps:$4 sm:$0xff]   ;;  %v301_v15 = vld [vmem:[#allocation5] ss:$16 sps:$4 sm:$0xff]   ;;  %vm103_vm1 = vcmask 293888  }
  0x1e   :  { %275 = vmatprep.subr.msk.bf16.mxu1 %vm107_vm0, %v272_v4  ;;  %v115_v10 = vsel %vm107_vm0, %v271_v6, 0  ;;  %131 = vmatpush1.bf16.msra.mxu0 %v109_v9  ;;  %v302_v16 = vld [vmem:[#allocation5 + $0x8] ss:$16 sps:$4 sm:$0xff]   ;;  %v42_v17 = vld [vmem:[#allocation2] sm:$0xf]  ;;  %s374_s0 = smov [#allocation7]  }
  0x1f   :  { %172 = vmatpush1.bf16.msra.mxu1 %v115_v10  ;;  %132 = vmatprep.subr.bf16.mxu0 %v291_v7  ;;  %s243_s1 = sshll.u32 %s374_s0, 4  ;;  %s244_s1 = int_to_ptr.vmem [resolvable:$true] %s243_s1 }
  0x20   :  { %173 = vmatprep.subr.bf16.mxu1 %v293_v8  ;;  %s343_s27 = scalar_lea.vmem %s244_s1, 256  ;;  %p348_p11 = scmp.lt.s32.totalorder %s244_s1, %s244_s1 }
  0x21   :  { %p344_p10 = scmp.ne.s32.totalorder %s244_s1, %s343_s27  ;;  %p349_p12 = scmp.lt.s32.totalorder %s343_s27, %s343_s27 }
  0x22   :  { %133 = vmatpush1.bf16.msra.mxu0 %v295_v11 }
  0x23   :  { %174 = vmatpush1.bf16.msra.mxu1 %v296_v12  ;;  %134 = vmatprep.subr.bf16.mxu0 %v297_v13  ;;  %p350_p13 = por %p349_p12, %p348_p11 }
  0x24   :  { %175 = vmatprep.subr.bf16.mxu1 %v299_v14 }
  0x25   :  { %p351_p0 = pnand %p350_p13, %p344_p10 }
  0x26   :  { %135 = vmatpush1.bf16.msra.mxu0 %v301_v15 }
  0x27   :  { %176 = vmatpush1.bf16.msra.mxu1 %v302_v16 }
  0x29   :  { %274 = vmatmul.mubr.msk.bf16.vlgmr.msra.gmra.mxu0 %vm103_vm1, %v42_v17 }
  0x2a   :  { %276 = vmatmul.mubr.msk.bf16.vlgmr.msra.gmra.mxu1 %vm103_vm1, %v42_v17 }
  0xe9   :  { %v154_v18 = vpop.f32.mrf.mxu0 }
  0xea   :  { %v195_v19 = vpop.f32.mrf.mxu1  ;;  %v227_v20 = vmul.f32 %v154_v18, %v154_v18 }
  0xeb   :  { %v229_v21 = vmul.f32 %v195_v19, %v195_v19  ;;  %v156_v22 = vpop.f32.mrf.mxu0 }
  0xec   :  { %v197_v23 = vpop.f32.mrf.mxu1  ;;  %v279_v24 = vpack.c.bf16 %v156_v22, %v154_v18  ;;  %v220_v25 = vadd.f32 %v156_v22, %v154_v18  ;;  %v228_v26 = vmul.f32 %v156_v22, %v156_v22 }
  0xed   :  { %v280_v27 = vpack.c.bf16 %v197_v23, %v195_v19  ;;  %v158_v28 = vpop.f32.mrf.mxu0  ;;  %v230_v36 = vmul.f32 %v197_v23, %v197_v23 }
  0xee   :  { %v199_v29 = vpop.f32.mrf.mxu1  ;;  %218 = vst [vmem:[#allocation7] sm:$0xff] %v279_v24  ;;  %v221_v30 = vadd.f32 %v220_v25, %v195_v19  ;;  %v231_v31 = vadd.f32 %v228_v26, %v227_v20 }
  0xef   :  { %219 = vst [vmem:[#allocation7 + $0x8] sm:$0xff] %v280_v27  ;;  %v159_v32 = vpop.f32.mrf.mxu0 }
  0xf0   :  { %v200_v33 = vpop.f32.mrf.mxu1  ;;  %v222_v34 = vadd.f32 %v221_v30, %v197_v23  ;;  %v232_v35 = vadd.f32 %v231_v31, %v229_v21 }
  0xf2   :  { %223 = vadd.xlane.f32.xlu0 %v222_v34  ;;  %v233_v37 = vadd.f32 %v232_v35, %v230_v36 }
  0xf6   :  { %234 = vadd.xlane.f32.xlu0 %v233_v37 }
  0xf7   :  { %354 = shalt.err (!%p351_p0)
}
  0xf8   :  { %246 = dma.vmem_to_hbm [thread:$0]  %s244_s1, 256, %s417_s2, [#allocation4]   ;;  %vm225_vm2 = vcmask 7168  }
 0x17b   :  { %v224_v38 = vpop.xlane.xlu0 %223 }
 0x17c   :  { %226 = vst.msk [vmem:[%s418_s3] sm:$0xff] %vm225_vm2, %v224_v38 }
 0x17f   :  { %v235_v39 = vpop.xlane.xlu0 %234 }
 0x180   :  { %236 = vst.msk [vmem:[%s419_s4] sm:$0xff] %vm225_vm2, %v235_v39 }
 0x181   :  { %367 = dma.done.wait [#allocation4], 256  }
 0x182   :  { %368 = vsyncadd [#allocation4], 4294967040 }
 0x183   :  { %258 = vsyncpa [#allocation3], 1 }
 0x184   :  { %259 = vsyncpa [#allocation6], 1 }
 0x185   :  { %260 = vsyncpa [#allocation4], 1 }

</bundles_post_ra>
